<compile_context>
chip_gen: v7x
topology: tpu7x:2x2x1
jax: 0.10.0
libtpu: 0.0.40
codegen_flags: <defaults>
</compile_context>

<pallas_src>
import functools

import jax
import jax.numpy as jnp
from jax import lax
from jax.experimental import pallas as pl
from jax.experimental.pallas import tpu as pltpu

_TARGET_BLOCK_BYTES = 4 * 1024 * 1024     # per-tile cap (past HBM-roofline knee)
_SPLIT_THRESHOLD_BYTES = 8 * 1024 * 1024  # don't tile at all below this


# ---------------------------------------------------------------------------
# Fused kernel: per-channel denormalization + one-hot prediction matrix
# ---------------------------------------------------------------------------
def _fused_kernel(std_ref, mean_ref, pred_ref, x_ref, y_ref, p_ref, *,
                  num_channels):
    # ---- denormalization:  y[r, :] = x[r, :] * std[r % C] + mean[r % C] ----
    tile_rows = x_ref.shape[0]
    row0 = pl.program_id(0) * tile_rows
    row_idx = row0 + lax.broadcasted_iota(jnp.int32, (tile_rows, 1), 0)
    chan = row_idx % num_channels

    scale = jnp.zeros((tile_rows, 1), jnp.float32)
    shift = jnp.zeros((tile_rows, 1), jnp.float32)
    for c in range(num_channels):                      # C is tiny (e.g. 3)
        scale = jnp.where(chan == c, std_ref[c], scale)
        shift = jnp.where(chan == c, mean_ref[c], shift)

    y_ref[...] = (x_ref[...].astype(jnp.float32) * scale + shift).astype(
        y_ref.dtype)

    # ---- one-hot preds (tiny): computed exactly once, on grid step 0 only.
    #      prediction == -1 (or any out-of-range id) -> all-zero row.
    @pl.when(pl.program_id(0) == 0)
    def _():
        batch, nc_pad = p_ref.shape[1], p_ref.shape[2]
        row_id = lax.broadcasted_iota(jnp.int32, (batch, 1), 0)
        pred_col = jnp.full((batch, 1), -1, jnp.int32)
        for b in range(batch):                          # (B,1) select chain only
            pred_col = jnp.where(row_id == b, pred_ref[b], pred_col)
        cls = lax.broadcasted_iota(jnp.int32, (batch, nc_pad), 1)
        p_ref[0] = jnp.where((cls == pred_col) & (pred_col >= 0),
                             1.0, 0.0).astype(jnp.float32)


def _choose_row_tile(rows, hw, itemsize, target_block_bytes,
                     split_threshold_bytes):
    """Row tile: full slab when small; else 8-aligned, <= target, even #steps."""
    total_bytes = rows * hw * itemsize
    if rows <= 8 or total_bytes < split_threshold_bytes:
        return rows                                    # single full-dim block
    bytes_per_row = max(1, hw * itemsize)
    cap = max(8, (target_block_bytes // bytes_per_row) // 8 * 8)
    tile = min(cap, ((rows + 7) // 8) * 8)
    num_steps = -(-rows // tile)
    if num_steps > 1 and num_steps % 2 == 1:
        # Balance across v7x's two TensorCores: prefer an even step count.
        balanced = ((-(-rows // (num_steps + 1)) + 7) // 8) * 8
        if 8 <= balanced <= tile:
            tile = balanced
    return tile


# ---------------------------------------------------------------------------
# FinalModel.forward equivalent
# ---------------------------------------------------------------------------
def final_model_forward(x_nchw, mean, std, prediction, num_classes, *,
                        out_dtype=None, donate_input=False,
                        target_block_bytes=_TARGET_BLOCK_BYTES,
                        split_threshold_bytes=_SPLIT_THRESHOLD_BYTES):
    """Returns (preds[B, num_classes], x_denorm[B, C, H, W])."""
    # TODO(synk): LLaVA 4-bit image-to-text generation, ToPILImage conversion
    # and closest-classname string matching have no Pallas equivalent; the
    # integer class predictions (-1 = "no match") are supplied directly.
    B, C, H, W = x_nchw.shape
    HW = H * W
    rows = B * C
    out_dt = jnp.dtype(out_dtype) if out_dtype is not None else x_nchw.dtype

    # Lane-dense slab: pad HW up to a multiple of 128 (explicit, not accidental).
    HW_pad = ((HW + 127) // 128) * 128
    x2 = x_nchw.reshape(rows, HW)
    if HW_pad != HW:
        x2 = jnp.pad(x2, ((0, 0), (0, HW_pad - HW)))

    tile_rows = _choose_row_tile(rows, HW_pad, x2.dtype.itemsize,
                                 target_block_bytes, split_threshold_bytes)
    num_steps = pl.cdiv(rows, tile_rows)
    nc_pad = max(128, ((num_classes + 127) // 128) * 128)  # lane-dense output

    std_s = std.astype(jnp.float32).reshape(C)
    mean_s = mean.astype(jnp.float32).reshape(C)
    pred_s = prediction.astype(jnp.int32).reshape(B)

    # Scoped-VMEM budget: double-buffered in + out tiles (+ tiny preds + slack),
    # >= v5e's 16 MiB default only when actually needed, capped under v7x's
    # 32 MiB scoped / 64 MiB physical budget.
    in_tile_bytes = tile_rows * HW_pad * x2.dtype.itemsize
    out_tile_bytes = tile_rows * HW_pad * out_dt.itemsize
    vmem_limit = min(30 << 20,
                     max(16 << 20,
                         2 * (in_tile_bytes + out_tile_bytes)
                         + 2 * B * nc_pad * 4 + (2 << 20)))

    kernel = functools.partial(_fused_kernel, num_channels=C)

    call_kwargs = {}
    if donate_input:
        # x2 is call-input index 3 (after std, mean, prediction); y2 is output 0.
        call_kwargs["input_output_aliases"] = {3: 0}

    y2, preds_all = pl.pallas_call(
        kernel,
        out_shape=(
            jax.ShapeDtypeStruct((rows, HW_pad), out_dt),
            jax.ShapeDtypeStruct((num_steps, B, nc_pad), jnp.float32),
        ),
        grid_spec=pltpu.PrefetchScalarGridSpec(
            num_scalar_prefetch=3,                     # std, mean, prediction -> SMEM
            grid=(num_steps,),
            in_specs=[
                pl.BlockSpec((tile_rows, HW_pad), lambda i, *_: (i, 0)),
            ],
            out_specs=(
                pl.BlockSpec((tile_rows, HW_pad), lambda i, *_: (i, 0)),
                pl.BlockSpec((1, B, nc_pad), lambda i, *_: (i, 0, 0)),
            ),
        ),
        compiler_params=pltpu.CompilerParams(
            dimension_semantics=("parallel",),
            vmem_limit_bytes=vmem_limit),
        **call_kwargs,
    )(std_s, mean_s, pred_s, x2)

    preds = preds_all[0, :, :num_classes]
    x_denorm = y2[:, :HW].reshape(B, C, H, W)
    return preds, x_denorm


# ---------------------------------------------------------------------------
# Reference helpers (pure JAX) for validation
# ---------------------------------------------------------------------------
def _ref(x, mean, std, prediction, num_classes):
    B, C = x.shape[0], x.shape[1]
    denorm = x * std.reshape(1, C, 1, 1) + mean.reshape(1, C, 1, 1)
    eye = jnp.eye(num_classes, dtype=jnp.float32)
    preds = jnp.where(
        (prediction >= 0)[:, None],
        eye[jnp.clip(prediction, 0, num_classes - 1)],
        jnp.zeros((B, num_classes), jnp.float32),
    )
    return preds, denorm


if __name__ == "__main__":
    key = jax.random.PRNGKey(0)

    # deterministic denorm parameters (inverse-normalize style mean/std)
    mean = jnp.array([0.4914, 0.4822, 0.4465], dtype=jnp.float32)
    std = jnp.array([0.2470, 0.2435, 0.2616], dtype=jnp.float32)
    NUM_CLASSES = 10

    # --- case 1: small shape consistent with the module (single grid step) ---
    B, C, H, W = 2, 3, 16, 16
    x = jax.random.normal(key, (B, C, H, W), dtype=jnp.float32)
    prediction = jnp.array([3, -1], dtype=jnp.int32)   # LLaVA-derived stand-in

    preds, x_denorm = final_model_forward(x, mean, std, prediction, NUM_CLASSES)
    preds = jax.block_until_ready(preds)
    x_denorm = jax.block_until_ready(x_denorm)
    ref_preds, ref_denorm = _ref(x, mean, std, prediction, NUM_CLASSES)
    assert preds.shape == (B, NUM_CLASSES) and preds.dtype == jnp.float32
    assert jnp.allclose(x_denorm, ref_denorm, atol=1e-6)
    assert jnp.allclose(preds, ref_preds)

    # --- case 2: non-128-aligned spatial size (exercises lane padding) -------
    B2, C2, H2, W2 = 2, 3, 20, 20
    x2 = jax.random.normal(jax.random.PRNGKey(1), (B2, C2, H2, W2),
                           dtype=jnp.float32)
    prediction2 = jnp.array([0, 9], dtype=jnp.int32)
    preds2, x_denorm2 = final_model_forward(x2, mean, std, prediction2,
                                            NUM_CLASSES)
    preds2 = jax.block_until_ready(preds2)
    x_denorm2 = jax.block_until_ready(x_denorm2)
    ref_preds2, ref_denorm2 = _ref(x2, mean, std, prediction2, NUM_CLASSES)
    assert jnp.allclose(x_denorm2, ref_denorm2, atol=1e-6)
    assert jnp.allclose(preds2, ref_preds2)

    # --- case 3: force the multi-step tiled path (partial last row tile) -----
    B3, C3, H3, W3 = 4, 3, 32, 32
    x3 = jax.random.normal(jax.random.PRNGKey(2), (B3, C3, H3, W3),
                           dtype=jnp.float32)
    prediction3 = jnp.array([0, 9, -1, 5], dtype=jnp.int32)
    preds3, x_denorm3 = final_model_forward(
        x3, mean, std, prediction3, NUM_CLASSES,
        target_block_bytes=16 * 1024, split_threshold_bytes=16 * 1024)
    preds3 = jax.block_until_ready(preds3)
    x_denorm3 = jax.block_until_ready(x_denorm3)
    ref_preds3, ref_denorm3 = _ref(x3, mean, std, prediction3, NUM_CLASSES)
    assert jnp.allclose(x_denorm3, ref_denorm3, atol=1e-6)
    assert jnp.allclose(preds3, ref_preds3)

    print("KERNEL_OK")
</pallas_src>

<mosaic_0001>
module attributes {stable_mosaic.version = 11 : i64} {
  func.func @_fused_kernel(%arg0: i32, %arg1: memref<3xf32, #tpu.memory_space<smem>>, %arg2: memref<3xf32, #tpu.memory_space<smem>>, %arg3: memref<2xi32, #tpu.memory_space<smem>>, %arg4: memref<6x256xf32, #tpu.memory_space<vmem>>, %arg5: memref<6x256xf32, #tpu.memory_space<vmem>>, %arg6: memref<1x2x128xf32, #tpu.memory_space<vmem>>) attributes {dimension_semantics = [#tpu.dimension_semantics<parallel>], iteration_bounds = array<i64: 1>, scalar_prefetch = 3 : i64, scratch_operands = 0 : i64, tpu.core_type = #tpu.core_type<tc>, window_params = [{transform_indices = @transform_0, window_bounds = array<i64: 6, 256>}, {transform_indices = @transform_1, window_bounds = array<i64: 6, 256>}, {transform_indices = @transform_2, window_bounds = array<i64: 1, 2, 128>}]} {
    %c6_i32 = arith.constant 6 : i32
    %0 = arith.muli %arg0, %c6_i32 : i32
    %1 = tpu.iota {dimensions = array<i32: 0>} : vector<6x1xi32>
    %2 = vector.broadcast %0 : i32 to vector<6x1xi32>
    %3 = arith.addi %2, %1 : vector<6x1xi32>
    %c3_i32 = arith.constant 3 : i32
    %c0_i32 = arith.constant 0 : i32
    %4 = arith.cmpi eq, %c3_i32, %c0_i32 : i32
    %c1_i32 = arith.constant 1 : i32
    %5 = arith.select %4, %c1_i32, %c3_i32 : i32
    %6 = vector.broadcast %5 : i32 to vector<6x1xi32>
    %7 = arith.remsi %3, %6 : vector<6x1xi32>
    %c0_i32_0 = arith.constant 0 : i32
    %8 = vector.broadcast %c0_i32_0 : i32 to vector<6x1xi32>
    %9 = arith.cmpi ne, %7, %8 : vector<6x1xi32>
    %c0_i32_1 = arith.constant 0 : i32
    %10 = vector.broadcast %c0_i32_1 : i32 to vector<6x1xi32>
    %11 = arith.cmpi slt, %7, %10 : vector<6x1xi32>
    %c0_i32_2 = arith.constant 0 : i32
    %12 = arith.cmpi slt, %5, %c0_i32_2 : i32
    %13 = vector.broadcast %12 : i1 to vector<6x1xi1>
    %14 = vector.broadcast %13 : vector<6x1xi1> to vector<6x1xi1>
    %15 = arith.xori %11, %14 : vector<6x1xi1>
    %16 = arith.andi %15, %9 : vector<6x1xi1>
    %17 = vector.broadcast %5 : i32 to vector<6x1xi32>
    %18 = arith.addi %7, %17 : vector<6x1xi32>
    %19 = arith.select %16, %18, %7 : vector<6x1xi1>, vector<6x1xi32>
    %cst = arith.constant 0.000000e+00 : f32
    %20 = vector.broadcast %cst : f32 to vector<6x1xf32>
    %cst_3 = arith.constant 0.000000e+00 : f32
    %21 = vector.broadcast %cst_3 : f32 to vector<6x1xf32>
    %c0_i32_4 = arith.constant 0 : i32
    %22 = vector.broadcast %c0_i32_4 : i32 to vector<6x1xi32>
    %23 = arith.cmpi eq, %19, %22 : vector<6x1xi32>
    %c0 = arith.constant 0 : index
    %24 = memref.load %arg1[%c0] : memref<3xf32, #tpu.memory_space<smem>>
    %25 = vector.broadcast %24 : f32 to vector<6x1xf32>
    %26 = arith.select %23, %25, %20 : vector<6x1xi1>, vector<6x1xf32>
    %c0_i32_5 = arith.constant 0 : i32
    %27 = vector.broadcast %c0_i32_5 : i32 to vector<6x1xi32>
    %28 = arith.cmpi eq, %19, %27 : vector<6x1xi32>
    %c0_6 = arith.constant 0 : index
    %29 = memref.load %arg2[%c0_6] : memref<3xf32, #tpu.memory_space<smem>>
    %30 = vector.broadcast %29 : f32 to vector<6x1xf32>
    %31 = arith.select %28, %30, %21 : vector<6x1xi1>, vector<6x1xf32>
    %c1_i32_7 = arith.constant 1 : i32
    %32 = vector.broadcast %c1_i32_7 : i32 to vector<6x1xi32>
    %33 = arith.cmpi eq, %19, %32 : vector<6x1xi32>
    %c1 = arith.constant 1 : index
    %34 = memref.load %arg1[%c1] : memref<3xf32, #tpu.memory_space<smem>>
    %35 = vector.broadcast %34 : f32 to vector<6x1xf32>
    %36 = arith.select %33, %35, %26 : vector<6x1xi1>, vector<6x1xf32>
    %c1_i32_8 = arith.constant 1 : i32
    %37 = vector.broadcast %c1_i32_8 : i32 to vector<6x1xi32>
    %38 = arith.cmpi eq, %19, %37 : vector<6x1xi32>
    %c1_9 = arith.constant 1 : index
    %39 = memref.load %arg2[%c1_9] : memref<3xf32, #tpu.memory_space<smem>>
    %40 = vector.broadcast %39 : f32 to vector<6x1xf32>
    %41 = arith.select %38, %40, %31 : vector<6x1xi1>, vector<6x1xf32>
    %c2_i32 = arith.constant 2 : i32
    %42 = vector.broadcast %c2_i32 : i32 to vector<6x1xi32>
    %43 = arith.cmpi eq, %19, %42 : vector<6x1xi32>
    %c2 = arith.constant 2 : index
    %44 = memref.load %arg1[%c2] : memref<3xf32, #tpu.memory_space<smem>>
    %45 = vector.broadcast %44 : f32 to vector<6x1xf32>
    %46 = arith.select %43, %45, %36 : vector<6x1xi1>, vector<6x1xf32>
    %c2_i32_10 = arith.constant 2 : i32
    %47 = vector.broadcast %c2_i32_10 : i32 to vector<6x1xi32>
    %48 = arith.cmpi eq, %19, %47 : vector<6x1xi32>
    %c2_11 = arith.constant 2 : index
    %49 = memref.load %arg2[%c2_11] : memref<3xf32, #tpu.memory_space<smem>>
    %50 = vector.broadcast %49 : f32 to vector<6x1xf32>
    %51 = arith.select %48, %50, %41 : vector<6x1xi1>, vector<6x1xf32>
    %c0_12 = arith.constant 0 : index
    %c0_13 = arith.constant 0 : index
    %52 = vector.load %arg4[%c0_12, %c0_13] : memref<6x256xf32, #tpu.memory_space<vmem>>, vector<6x256xf32>
    %53 = vector.broadcast %46 : vector<6x1xf32> to vector<6x256xf32>
    %54 = arith.mulf %52, %53 : vector<6x256xf32>
    %55 = vector.broadcast %51 : vector<6x1xf32> to vector<6x256xf32>
    %56 = arith.addf %54, %55 : vector<6x256xf32>
    %c0_14 = arith.constant 0 : index
    %c0_15 = arith.constant 0 : index
    %57 = vector.load %arg5[%c0_14, %c0_15] : memref<6x256xf32, #tpu.memory_space<vmem>>, vector<6x256xf32>
    tpu.vector_store %arg5[%c0_14, %c0_15], %56 {strides = array<i32>} : memref<6x256xf32, #tpu.memory_space<vmem>>, vector<6x256xf32>,
    %c0_i32_16 = arith.constant 0 : i32
    %58 = arith.cmpi eq, %arg0, %c0_i32_16 : i32
    %59 = arith.extui %58 : i1 to i32
    %c0_i32_17 = arith.constant 0 : i32
    %60 = arith.cmpi ne, %59, %c0_i32_17 : i32
    scf.if %60 {
      %61 = tpu.iota {dimensions = array<i32: 0>} : vector<2x1xi32>
      %c-1_i32 = arith.constant -1 : i32
      %62 = vector.broadcast %c-1_i32 : i32 to vector<2x1xi32>
      %c0_i32_18 = arith.constant 0 : i32
      %63 = vector.broadcast %c0_i32_18 : i32 to vector<2x1xi32>
      %64 = arith.cmpi eq, %61, %63 : vector<2x1xi32>
      %c0_19 = arith.constant 0 : index
      %65 = memref.load %arg3[%c0_19] : memref<2xi32, #tpu.memory_space<smem>>
      %66 = vector.broadcast %65 : i32 to vector<2x1xi32>
      %67 = arith.select %64, %66, %62 : vector<2x1xi1>, vector<2x1xi32>
      %c1_i32_20 = arith.constant 1 : i32
      %68 = vector.broadcast %c1_i32_20 : i32 to vector<2x1xi32>
      %69 = arith.cmpi eq, %61, %68 : vector<2x1xi32>
      %c1_21 = arith.constant 1 : index
      %70 = memref.load %arg3[%c1_21] : memref<2xi32, #tpu.memory_space<smem>>
      %71 = vector.broadcast %70 : i32 to vector<2x1xi32>
      %72 = arith.select %69, %71, %67 : vector<2x1xi1>, vector<2x1xi32>
      %73 = tpu.iota {dimensions = array<i32: 1>} : vector<2x128xi32>
      %74 = vector.broadcast %72 : vector<2x1xi32> to vector<2x128xi32>
      %75 = arith.cmpi eq, %73, %74 : vector<2x128xi32>
      %c0_i32_22 = arith.constant 0 : i32
      %76 = vector.broadcast %c0_i32_22 : i32 to vector<2x1xi32>
      %77 = arith.cmpi sge, %72, %76 : vector<2x1xi32>
      %78 = vector.broadcast %77 : vector<2x1xi1> to vector<2x128xi1>
      %79 = arith.andi %75, %78 : vector<2x128xi1>
      %cst_23 = arith.constant 1.000000e+00 : f32
      %cst_24 = arith.constant 0.000000e+00 : f32
      %80 = vector.broadcast %cst_23 : f32 to vector<2x128xf32>
      %81 = vector.broadcast %cst_24 : f32 to vector<2x128xf32>
      %82 = arith.select %79, %80, %81 : vector<2x128xi1>, vector<2x128xf32>
      %c0_25 = arith.constant 0 : index
      %c0_26 = arith.constant 0 : index
      %c0_27 = arith.constant 0 : index
      %83 = vector.load %arg6[%c0_25, %c0_26, %c0_27] : memref<1x2x128xf32, #tpu.memory_space<vmem>>, vector<1x2x128xf32>
      %84 = vector.shape_cast %83 : vector<1x2x128xf32> to vector<2x128xf32>
      %85 = vector.shape_cast %82 : vector<2x128xf32> to vector<1x2x128xf32>
      tpu.vector_store %arg6[%c0_25, %c0_26, %c0_27], %85 {strides = array<i32>} : memref<1x2x128xf32, #tpu.memory_space<vmem>>, vector<1x2x128xf32>,
    } else {
    }
    return
  }
  func.func @transform_0(%arg0: i32, %arg1: memref<3xf32, #tpu.memory_space<smem>>, %arg2: memref<3xf32, #tpu.memory_space<smem>>, %arg3: memref<2xi32, #tpu.memory_space<smem>>) -> (i32, i32) {
    %c0_i32 = arith.constant 0 : i32
    %c0_i32_0 = arith.constant 0 : i32
    return %arg0, %c0_i32 : i32, i32
  }
  func.func @transform_1(%arg0: i32, %arg1: memref<3xf32, #tpu.memory_space<smem>>, %arg2: memref<3xf32, #tpu.memory_space<smem>>, %arg3: memref<2xi32, #tpu.memory_space<smem>>) -> (i32, i32) {
    %c0_i32 = arith.constant 0 : i32
    %c0_i32_0 = arith.constant 0 : i32
    return %arg0, %c0_i32 : i32, i32
  }
  func.func @transform_2(%arg0: i32, %arg1: memref<3xf32, #tpu.memory_space<smem>>, %arg2: memref<3xf32, #tpu.memory_space<smem>>, %arg3: memref<2xi32, #tpu.memory_space<smem>>) -> (i32, i32, i32) {
    %c0_i32 = arith.constant 0 : i32
    %c0_i32_0 = arith.constant 0 : i32
    %c0_i32_1 = arith.constant 0 : i32
    return %arg0, %c0_i32, %c0_i32_0 : i32, i32, i32
  }
}

</mosaic_0001>

<bundles_post_ra>
// kernel: tpu_custom_call.1
= control target key start
LH: loop header
LB: loop body
LE: loop exit
PB: predicated region body
PF: predicated region fallthrough
CT: control target
= control target key end

     0   :  { %s380_s0 = inlined_call_operand.hbm [shape: f32[3], index: 0, kind: input, shape index: {}]   ;;  %s381_s3 = inlined_call_operand.hbm [shape: f32[6,256], index: 3, kind: input, shape index: {}]   ;;  %s382_s4 = inlined_call_operand.hbm [shape: f32[6,256], index: 4, kind: output, shape index: {0}]   ;;  %s383_s5 = inlined_call_operand.hbm [shape: f32[1,2,128], index: 5, kind: output, shape index: {1}]   ;;  %s384_s1 = inlined_call_operand.vmem [shape: f32[3], index: 1, kind: input, shape index: {}]   ;;  %s385_s2 = inlined_call_operand.vmem [shape: s32[2], index: 2, kind: input, shape index: {}]  }
   0x1   :  { %s153_s20 = scalar_lea.hbm %s380_s0, 16 }
   0x2   :  { %p154_p0 = scmp.ne.s32.totalorder %s380_s0, %s153_s20  ;;  %p157_p1 = scmp.lt.u32.totalorder %s153_s20, %s380_s0 }
   0x4   :  { %p159_p2 = pnand %p157_p1, %p154_p0 }
   0x6   :  { %162 = shalt.err (!%p159_p2)  }
   0x7   :  { %s261_s25 = smov [#allocation3]   ;;  %s13_s30 = sshll.u32 %s384_s1, 4  ;;  %s14_s30 = int_to_ptr.vmem [resolvable:$true] %s13_s30 }
   0x8   :  { %12 = dma.hbm_to_smem %s380_s0, 16, %s261_s25, [#allocation2] }
   0x9   :  { %s17_s8 = sshll.u32 %s385_s2, 4  ;;  %s163_s9 = scalar_lea.vmem %s14_s30, 16  ;;  %s18_s8 = int_to_ptr.vmem [resolvable:$true] %s17_s8 }
   0xa   :  { %p164_p3 = scmp.ne.s32.totalorder %s14_s30, %s163_s9  ;;  %p168_p4 = scmp.lt.s32.totalorder %s14_s30, %s14_s30 }
   0xb   :  { %p169_p5 = scmp.lt.s32.totalorder %s163_s9, %s163_s9 }
   0xd   :  { %p170_p6 = por %p169_p5, %p168_p4 }
   0xf   :  { %p171_p7 = pnand %p170_p6, %p164_p3 }
  0x11   :  { %174 = shalt.err (!%p171_p7)  }
  0x12   :  { %s262_s10 = smov [#allocation4]   ;;  %s175_s0 = scalar_lea.vmem %s18_s8, 16 }
  0x13   :  { %16 = dma.vmem_to_smem %s14_s30, 16, %s262_s10, [#allocation2] }
  0x14   :  { %p176_p8 = scmp.ne.s32.totalorder %s18_s8, %s175_s0  ;;  %p180_p9 = scmp.lt.s32.totalorder %s18_s8, %s18_s8 }
  0x15   :  { %p181_p10 = scmp.lt.s32.totalorder %s175_s0, %s175_s0 }
  0x17   :  { %p182_p11 = por %p181_p10, %p180_p9 }
  0x19   :  { %p183_p12 = pnand %p182_p11, %p176_p8 }
  0x1b   :  { %186 = shalt.err (!%p183_p12)  }
  0x1c   :  { %s263_s1 = smov [#allocation5]  }
  0x1d   :  { %20 = dma.vmem_to_smem %s18_s8, 16, %s263_s1, [#allocation2] }
  0x1e   :  { %253 = dma.done.wait [#allocation2], 48 }
  0x1f   :  { %254 = vsyncadd [#allocation2], 4294967248 }
  0x20   :  { %22 = sfence }
  0x21   :  { %23 = vsyncpa [#allocation7], 0 }
  0x22   :  { %24 = vsyncpa [#allocation8], 0 }
  0x23   :  { %25 = vsyncpa [#allocation11], 0  ;;  %s264_s2 = smov [#allocation6]   ;;  %s187_s14 = scalar_lea.hbm %s381_s3, 256 }
  0x24   :  { %s32_s11 = sshll.u32 %s264_s2, 4  ;;  %p188_p13 = scmp.ne.s32.totalorder %s381_s3, %s187_s14  ;;  %s33_s11 = int_to_ptr.vmem [resolvable:$true] %s32_s11 }
  0x25   :  { %p191_p0 = scmp.lt.u32.totalorder %s187_s14, %s381_s3 }
  0x27   :  { %p193_p1 = pnand %p191_p0, %p188_p13 }
  0x29   :  { %196 = shalt.err (!%p193_p1)
}
  0x2a   :  { %s197_s19 = scalar_lea.vmem %s33_s11, 256  ;;  %p202_p3 = scmp.lt.s32.totalorder %s33_s11, %s33_s11 }
  0x2b   :  { %p198_p2 = scmp.ne.s32.totalorder %s33_s11, %s197_s19  ;;  %p203_p4 = scmp.lt.s32.totalorder %s197_s19, %s197_s19 }
  0x2d   :  { %p204_p5 = por %p203_p4, %p202_p3 }
  0x2f   :  { %p205_p6 = pnand %p204_p5, %p198_p2 }
  0x31   :  { %208 = shalt.err (!%p205_p6)
}
  0x32   :  { %35 = dma.hbm_to_vmem [thread:$0]  %s381_s3, 256, %s33_s11, [#allocation7]  }
  0x33   :  { %255 = dma.done.wait [#allocation7], 256  }
  0x34   :  { %256 = vsyncadd [#allocation7], 4294967040  ;;  %v40_v0 = vlaneseq  ;;  %s94_s22 = sld [smem:[#allocation5]]  ;;  %s143_s23 = sld [smem:[#allocation5 + $0x1]]  ;;  %v266_v15 = vmov 0.0  }
  0x35   :  { %s331_s24 = sld [smem:[#allocation3]]  ;;  %s335_s26 = sld [smem:[#allocation3 + $0x1]] }
  0x36   :  { %v41_v1 = vshrl.u32 %v40_v0, 7  ;;  %s333_s25 = sld [smem:[#allocation4]]  ;;  %s338_s27 = sld [smem:[#allocation4 + $0x1]]  ;;  %v102_v5 = vand.u32 127, %v40_v0 }
  0x37   :  { %s340_s3 = sld [smem:[#allocation3 + $0x2]]  ;;  %s265_s29 = smov [#allocation10]  }
  0x38   :  { %v328_v2 = vmul.u32.u64.low 2863311531, %v41_v1  ;;  %v329_v3 = vmul.u32.u64.high 2863311531, %v41_v1, %v328_v2  ;;  %vm93_vm0 = vcmp.eq.s32.totalorder %v41_v1, 0  ;;  %s342_s28 = sld [smem:[#allocation4 + $0x2]]  ;;  %vm97_vm1 = vcmp.eq.s32.totalorder %v41_v1, 1  ;;  %s126_s30 = sshll.u32 %s265_s29, 4  ;;  %s127_s30 = int_to_ptr.vmem [resolvable:$true] %s126_s30 }
  0x39   :  { %s209_s6 = scalar_lea.vmem %s127_s30, 32  ;;  %p214_p8 = scmp.lt.s32.totalorder %s127_s30, %s127_s30 }
  0x3a   :  { %v50_v4 = vshrl.u32 %v329_v3, 1  ;;  %v95_v7 = vstv %s94_s22  ;;  %v99_v9 = vstv %s143_s23  ;;  %p210_p7 = scmp.ne.s32.totalorder %s127_s30, %s209_s6  ;;  %p215_p9 = scmp.lt.s32.totalorder %s209_s6, %s209_s6 }
  0x3b   :  { %v96_v8 = vsel %vm93_vm0, %v95_v7, 4294967295  ;;  %v62_v13 = vstv %s331_s24  ;;  %v69_v18 = vstv %s335_s26 }
  0x3c   :  { %v51_v6 = vmul.u32 3, %v50_v4  ;;  %v100_v11 = vsel %vm97_vm1, %v99_v9, %v96_v8  ;;  %v65_v14 = vstv %s333_s25  ;;  %v72_v19 = vstv %s338_s27  ;;  %p216_p10 = por %p215_p9, %p214_p8 }
  0x3d   :  { %vm103_vm2 = vcmp.eq.s32.totalorder %v102_v5, %v100_v11  ;;  %vm104_vm3 = vcmp.ge.s32.totalorder %v100_v11, 0  ;;  %v76_v20 = vstv %s340_s3 }
  0x3e   :  { %v52_v10 = vsub.s32 %v41_v1, %v51_v6  ;;  %vm107_vm6 = vmand %vm103_vm2, %vm104_vm3  ;;  %v79_v21 = vstv %s342_s28  ;;  %p217_p11 = pnand %p216_p10, %p210_p7 }
  0x3f   :  { %v108_v16 = vsel %vm107_vm6, 1.0, %v266_v15 }
  0x40   :  { %vm55_vm4 = vcmp.ne.s32.totalorder %v52_v10, 0  ;;  %vm56_vm5 = vcmp.lt.s32.totalorder %v52_v10, 0  ;;  %v58_v12 = vadd.s32 3, %v52_v10  ;;  %109 = vst [vmem:[#allocation10] sm:$0x3] %v108_v16 }
  0x41   :  { %vm57_vm7 = vmand %vm56_vm5, %vm55_vm4 }
  0x42   :  { %v59_v17 = vsel %vm57_vm7, %v58_v12, %v52_v10 }
  0x43   :  { %vm60_vm8 = vcmp.eq.s32.totalorder %v59_v17, 0  ;;  %vm67_vm9 = vcmp.eq.s32.totalorder %v59_v17, 1  ;;  %vm74_vm10 = vcmp.eq.s32.totalorder %v59_v17, 2 }
  0x44   :  { %220 = shalt.err (!%p217_p11)
}
  0x45   :  { %s221_s9 = scalar_lea.hbm %s383_s5, 32 }
  0x46   :  { %p222_p12 = scmp.ne.s32.totalorder %s383_s5, %s221_s9  ;;  %p225_p13 = scmp.lt.u32.totalorder %s221_s9, %s383_s5 }
  0x48   :  { %p227_p0 = pnand %p225_p13, %p222_p12 }
  0x4a   :  { %230 = shalt.err (!%p227_p0)
}
  0x4b   :  { %129 = dma.vmem_to_hbm [thread:$0]  %s127_s30, 32, %s383_s5, [#allocation11]   ;;  %v63_v22 = vsel %vm60_vm8, %v62_v13, 0.0  ;;  %v66_v23 = vsel %vm60_vm8, %v65_v14, 0.0  ;;  %v81_v24 = vld [vmem:[#allocation6] sm:$0x3f] }
  0x4c   :  { %v82_v25 = vld [vmem:[#allocation6 + $0x8] sm:$0x3f]  ;;  %v70_v26 = vsel %vm67_vm9, %v69_v18, %v63_v22  ;;  %v73_v27 = vsel %vm67_vm9, %v72_v19, %v66_v23  ;;  %s267_s13 = smov [#allocation9]  }
  0x4d   :  { %v77_v28 = vsel %vm74_vm10, %v76_v20, %v70_v26  ;;  %v80_v29 = vsel %vm74_vm10, %v79_v21, %v73_v27  ;;  %s116_s14 = sshll.u32 %s267_s13, 4  ;;  %s117_s14 = int_to_ptr.vmem [resolvable:$true] %s116_s14 }
  0x4e   :  { %v83_v30 = vmul.f32 %v81_v24, %v77_v28  ;;  %v84_v31 = vmul.f32 %v82_v25, %v77_v28  ;;  %s231_s5 = scalar_lea.vmem %s117_s14, 256  ;;  %p236_p2 = scmp.lt.s32.totalorder %s117_s14, %s117_s14 }
  0x4f   :  { %p232_p1 = scmp.ne.s32.totalorder %s117_s14, %s231_s5  ;;  %p237_p3 = scmp.lt.s32.totalorder %s231_s5, %s231_s5 }
  0x50   :  { %v85_v32 = vadd.f32 %v83_v30, %v80_v29  ;;  %v86_v33 = vadd.f32 %v84_v31, %v80_v29 }
  0x51   :  { %p238_p4 = por %p237_p3, %p236_p2 }
  0x52   :  { %87 = vst [vmem:[#allocation9] sm:$0x3f] %v85_v32  ;;  %88 = vst [vmem:[#allocation9 + $0x8] sm:$0x3f] %v86_v33 }
  0x53   :  { %p239_p5 = pnand %p238_p4, %p232_p1 }
  0x55   :  { %242 = shalt.err (!%p239_p5)
}
  0x56   :  { %s243_s17 = scalar_lea.hbm %s382_s4, 256 }
  0x57   :  { %p244_p6 = scmp.ne.s32.totalorder %s382_s4, %s243_s17  ;;  %p247_p7 = scmp.lt.u32.totalorder %s243_s17, %s382_s4 }
  0x59   :  { %p249_p8 = pnand %p247_p7, %p244_p6 }
  0x5b   :  { %252 = shalt.err (!%p249_p8)
}
  0x5c   :  { %119 = dma.vmem_to_hbm [thread:$0]  %s117_s14, 256, %s382_s4, [#allocation8]  }
  0x5d   :  { %257 = dma.done.wait [#allocation8], 256  }
  0x5e   :  { %258 = vsyncadd [#allocation8], 4294967040 }
  0x5f   :  { %259 = dma.done.wait [#allocation11], 32  }
  0x60   :  { %260 = vsyncadd [#allocation11], 4294967264 }
  0x61   :  { %136 = vsyncpa [#allocation7], 1 }
  0x62   :  { %137 = vsyncpa [#allocation8], 1 }
  0x63   :  { %138 = vsyncpa [#allocation11], 1 }

</bundles_post_ra>
